<compile_context>
chip_gen: v7x
topology: tpu7x:2x2x1
jax: 0.10.0
libtpu: 0.0.40
codegen_flags: <defaults>
</compile_context>

<pallas_src>
import jax
import jax.numpy as jnp
from jax import lax
from jax.experimental import pallas as pl
from jax.experimental.pallas import tpu as pltpu


# ----------------------------------------------------------------------------
# Kernel bodies
# ----------------------------------------------------------------------------

def _max4_kernel(a_ref, b_ref, c_ref, d_ref, o_ref):
    # Elementwise max of the four 2x2-window taps == MaxPool2d(2).
    o_ref[...] = jnp.maximum(jnp.maximum(a_ref[...], b_ref[...]),
                             jnp.maximum(c_ref[...], d_ref[...]))


def _conv_affine_relu_kernel(x_ref, w_ref, s_ref, b_ref, o_ref):
    # x_ref: [1, K, tp] im2col pixels    w_ref: [Cout, K]
    # s_ref/b_ref: [Cout, 1] folded BN/bias          o_ref: [1, Cout, tp]
    acc = jnp.dot(w_ref[...], x_ref[0], preferred_element_type=jnp.float32)
    acc = acc * s_ref[...] + b_ref[...]
    o_ref[0] = jnp.maximum(acc, 0.0).astype(o_ref.dtype)


def _dualconv_affine_relu_kernel(x_ref, y_ref, wx_ref, wy_ref, s_ref, b_ref, o_ref):
    # Split contraction == conv over interlaced_cat(x, y); the channel
    # interleave lives purely in the (VMEM-resident) weight halves.
    acc = jnp.dot(wx_ref[...], x_ref[0], preferred_element_type=jnp.float32)
    acc = acc + jnp.dot(wy_ref[...], y_ref[0], preferred_element_type=jnp.float32)
    acc = acc * s_ref[...] + b_ref[...]
    o_ref[0] = jnp.maximum(acc, 0.0).astype(o_ref.dtype)


# ----------------------------------------------------------------------------
# Wrappers
# ----------------------------------------------------------------------------

def _pick_tile(hw, k, target_bytes=2 * 1024 * 1024):
    """Lane-dense pixel tile: full row if it fits, else a multiple of 128 sized
    so the (double-buffered) im2col block stays ~target_bytes."""
    tp = target_bytes // (4 * max(k, 1))
    tp = (max(128, min(tp, 8192)) // 128) * 128
    if tp >= hw:
        return hw          # full last dim: always a legal block
    return tp              # multiple of 128; ragged tail handled by cdiv grid


def _im2col(x_nchw, ksize, stride, padding):
    """NCHW -> [N, C*k*k, Ho*Wo] patch matrix, tap order (c, ky, kx)."""
    n, c, h, w = x_nchw.shape
    ho = (h + 2 * padding - ksize) // stride + 1
    wo = (w + 2 * padding - ksize) // stride + 1
    xp = jnp.pad(x_nchw, ((0, 0), (0, 0), (padding, padding), (padding, padding)))
    taps = []
    for ky in range(ksize):
        for kx in range(ksize):
            taps.append(lax.slice(
                xp, (0, 0, ky, kx),
                (n, c, ky + (ho - 1) * stride + 1, kx + (wo - 1) * stride + 1),
                (1, 1, stride, stride)))
    xcol = jnp.stack(taps, axis=2)                     # [N, C, k*k, Ho, Wo]
    return xcol.reshape(n, c * ksize * ksize, ho * wo), ho, wo


def _conv_bn_relu(x, weight, scale, shift, *, stride=1, padding=1):
    """ReLU(scale * Conv(x, weight) + shift), NCHW in/out, fused in one kernel."""
    n = x.shape[0]
    cout, cin, kh, kw = weight.shape
    xcol, ho, wo = _im2col(x, kh, stride, padding)
    k, hw = cin * kh * kw, ho * wo
    w2 = weight.reshape(cout, k)
    s2 = scale.reshape(cout, 1).astype(jnp.float32)
    b2 = shift.reshape(cout, 1).astype(jnp.float32)
    tp = _pick_tile(hw, k)

    out = pl.pallas_call(
        _conv_affine_relu_kernel,
        out_shape=jax.ShapeDtypeStruct((n, cout, hw), x.dtype),
        grid_spec=pltpu.PrefetchScalarGridSpec(
            num_scalar_prefetch=0,
            grid=(n, pl.cdiv(hw, tp)),
            in_specs=[
                pl.BlockSpec((1, k, tp), lambda i, j: (i, 0, j)),
                pl.BlockSpec((cout, k), lambda i, j: (0, 0)),   # VMEM-resident
                pl.BlockSpec((cout, 1), lambda i, j: (0, 0)),   # VMEM-resident
                pl.BlockSpec((cout, 1), lambda i, j: (0, 0)),   # VMEM-resident
            ],
            out_specs=pl.BlockSpec((1, cout, tp), lambda i, j: (i, 0, j)),
        ),
        compiler_params=pltpu.CompilerParams(
            dimension_semantics=("parallel", "parallel")),
    )(xcol, w2, s2, b2)
    return out.reshape(n, cout, ho, wo)


def _dualconv_bn_relu(x, y, wx, wy, scale, shift, *, padding=1):
    """ReLU(scale * (Conv(x,wx) + Conv(y,wy)) + shift) == fused conv over the
    interlaced channel concat of x and y (interleave folded into wx/wy)."""
    n = x.shape[0]
    cout, cx, kh, kw = wx.shape
    cy = wy.shape[1]
    xcol, ho, wo = _im2col(x, kh, 1, padding)
    ycol, ho2, wo2 = _im2col(y, kh, 1, padding)
    assert (ho, wo) == (ho2, wo2)
    kx_dim, ky_dim, hw = cx * kh * kw, cy * kh * kw, ho * wo
    wx2 = wx.reshape(cout, kx_dim)
    wy2 = wy.reshape(cout, ky_dim)
    s2 = scale.reshape(cout, 1).astype(jnp.float32)
    b2 = shift.reshape(cout, 1).astype(jnp.float32)
    tp = _pick_tile(hw, kx_dim + ky_dim)

    out = pl.pallas_call(
        _dualconv_affine_relu_kernel,
        out_shape=jax.ShapeDtypeStruct((n, cout, hw), x.dtype),
        grid_spec=pltpu.PrefetchScalarGridSpec(
            num_scalar_prefetch=0,
            grid=(n, pl.cdiv(hw, tp)),
            in_specs=[
                pl.BlockSpec((1, kx_dim, tp), lambda i, j: (i, 0, j)),
                pl.BlockSpec((1, ky_dim, tp), lambda i, j: (i, 0, j)),
                pl.BlockSpec((cout, kx_dim), lambda i, j: (0, 0)),
                pl.BlockSpec((cout, ky_dim), lambda i, j: (0, 0)),
                pl.BlockSpec((cout, 1), lambda i, j: (0, 0)),
                pl.BlockSpec((cout, 1), lambda i, j: (0, 0)),
            ],
            out_specs=pl.BlockSpec((1, cout, tp), lambda i, j: (i, 0, j)),
        ),
        compiler_params=pltpu.CompilerParams(
            dimension_semantics=("parallel", "parallel")),
    )(xcol, ycol, wx2, wy2, s2, b2)
    return out.reshape(n, cout, ho, wo)


def _maxpool2x2(x):
    """MaxPool2d(2): elementwise max of the four 2x2-window taps."""
    n, c, h, w = x.shape
    ho, wo = h // 2, w // 2
    hw = ho * wo
    taps = [x[:, :, dy::2, dx::2][:, :, :ho, :wo].reshape(n, c, hw)
            for dy in (0, 1) for dx in (0, 1)]
    tp = _pick_tile(hw, 4 * c)
    out = pl.pallas_call(
        _max4_kernel,
        out_shape=jax.ShapeDtypeStruct((n, c, hw), x.dtype),
        grid_spec=pltpu.PrefetchScalarGridSpec(
            num_scalar_prefetch=0,
            grid=(n, pl.cdiv(hw, tp)),
            in_specs=[pl.BlockSpec((1, c, tp), lambda i, j: (i, 0, j))] * 4,
            out_specs=pl.BlockSpec((1, c, tp), lambda i, j: (i, 0, j)),
        ),
        compiler_params=pltpu.CompilerParams(
            dimension_semantics=("parallel", "parallel")),
    )(*taps)
    return out.reshape(n, c, ho, wo)


def _bn_fold(gamma, beta, mean, var, eps=1e-5):
    scale = gamma / jnp.sqrt(var + eps)
    return scale, beta - mean * scale


def fgdownv1_forward(fx, gx, params):
    """FGDownv_1.forward (inference). Returns (chunk0, chunk1)."""
    # f branch: MaxPool2d(2)
    fxd = _maxpool2x2(fx)
    # g branch: CR = Conv3x3(stride 2, pad 1) + bias + ReLU
    cr_w = params["cr_w"]
    gxd = _conv_bn_relu(gx, cr_w,
                        scale=jnp.ones((cr_w.shape[0],), jnp.float32),
                        shift=params["cr_b"], stride=2, padding=1)
    # pad2same: zero-pad fx (bottom/right) to gx's spatial size (odd inputs).
    dh = gxd.shape[2] - fxd.shape[2]
    dw = gxd.shape[3] - fxd.shape[3]
    if dh > 0 or dw > 0:
        fxd = jnp.pad(fxd, ((0, 0), (0, 0), (0, max(dh, 0)), (0, max(dw, 0))))
    # fuse conv #1 over interlaced_cat(fxd, gxd): interleave folded into weights.
    w1 = params["fuse1_w"]                                   # [mid, 2C, 3, 3]
    s1, b1 = _bn_fold(params["bn1_g"], params["bn1_b"],
                      params["bn1_m"], params["bn1_v"])
    h1 = _dualconv_bn_relu(fxd, gxd, w1[:, 0::2], w1[:, 1::2], s1, b1, padding=1)
    # fuse conv #2: GroupConv2d -> 2*OUT channels, + BN + ReLU.
    s2, b2 = _bn_fold(params["bn2_g"], params["bn2_b"],
                      params["bn2_m"], params["bn2_v"])
    h2 = _conv_bn_relu(h1, params["fuse2_w"], s2, b2, stride=1, padding=1)
    oc = h2.shape[1] // 2
    return h2[:, :oc], h2[:, oc:]                            # torch.chunk(.., 2, 1)


# ----------------------------------------------------------------------------
# Pure-JAX reference (independent implementation, full-precision convs)
# ----------------------------------------------------------------------------

def _ref_forward(fx, gx, params, eps=1e-5):
    prec = lax.Precision.HIGHEST

    def conv(x, w, stride=1, padding=1):
        return lax.conv_general_dilated(
            x, w, (stride, stride), [(padding, padding)] * 2,
            dimension_numbers=("NCHW", "OIHW", "NCHW"), precision=prec)

    def bn(x, g, b, m, v):
        return ((x - m[None, :, None, None])
                / jnp.sqrt(v + eps)[None, :, None, None]
                * g[None, :, None, None] + b[None, :, None, None])

    n, c, h, w = fx.shape
    fxd = fx[:, :, :(h // 2) * 2, :(w // 2) * 2]
    fxd = fxd.reshape(n, c, h // 2, 2, w // 2, 2).max(axis=(3, 5))
    gxd = jnp.maximum(conv(gx, params["cr_w"], 2, 1)
                      + params["cr_b"][None, :, None, None], 0.0)
    dh = gxd.shape[2] - fxd.shape[2]
    dw = gxd.shape[3] - fxd.shape[3]
    fxd = jnp.pad(fxd, ((0, 0), (0, 0), (0, dh), (0, dw)))
    cat = jnp.stack([fxd, gxd], axis=2).reshape(n, 2 * c, *gxd.shape[2:])
    h1 = jnp.maximum(bn(conv(cat, params["fuse1_w"]), params["bn1_g"],
                        params["bn1_b"], params["bn1_m"], params["bn1_v"]), 0.0)
    h2 = jnp.maximum(bn(conv(h1, params["fuse2_w"]), params["bn2_g"],
                        params["bn2_b"], params["bn2_m"], params["bn2_v"]), 0.0)
    oc = h2.shape[1] // 2
    return h2[:, :oc], h2[:, oc:]


if __name__ == "__main__":
    key = jax.random.PRNGKey(0)
    keys = jax.random.split(key, 12)
    N, C, OUT, H, W = 2, 4, 8, 16, 16

    fx = jax.random.normal(keys[0], (N, C, H, W), jnp.float32)
    gx = jax.random.normal(keys[1], (N, C, H, W), jnp.float32)

    params = {
        # CR: Conv2d(C, C, 3, stride=2, padding=1) + bias -> ReLU
        "cr_w": jax.random.normal(keys[2], (C, C, 3, 3), jnp.float32) * 0.1,
        "cr_b": jax.random.normal(keys[3], (C,), jnp.float32) * 0.1,
        # fuse conv1: Conv2d(2C, OUT, 3, pad=1, bias=False) + BN(OUT) + ReLU
        "fuse1_w": jax.random.normal(keys[4], (OUT, 2 * C, 3, 3), jnp.float32) * 0.1,
        "bn1_g": jax.random.normal(keys[5], (OUT,), jnp.float32) * 0.2 + 1.0,
        "bn1_b": jax.random.normal(keys[6], (OUT,), jnp.float32) * 0.1,
        "bn1_m": jax.random.normal(keys[7], (OUT,), jnp.float32) * 0.1,
        "bn1_v": jax.random.uniform(keys[8], (OUT,), jnp.float32, 0.5, 1.5),
        # GroupConv2d(OUT, OUT, 3, 1, 1, bias=False, out_groups=2) + BN(2*OUT)
        "fuse2_w": jax.random.normal(keys[9], (2 * OUT, OUT, 3, 3), jnp.float32) * 0.1,
        "bn2_g": jax.random.normal(keys[10], (2 * OUT,), jnp.float32) * 0.2 + 1.0,
        "bn2_b": jax.random.normal(keys[11], (2 * OUT,), jnp.float32) * 0.1,
        "bn2_m": jnp.zeros((2 * OUT,), jnp.float32),
        "bn2_v": jnp.ones((2 * OUT,), jnp.float32),
    }

    out0, out1 = jax.jit(fgdownv1_forward)(fx, gx, params)
    out0, out1 = jax.block_until_ready((out0, out1))

    ref0, ref1 = _ref_forward(fx, gx, params)

    assert out0.shape == (N, OUT, H // 2, W // 2)
    assert out1.shape == (N, OUT, H // 2, W // 2)
    assert jnp.allclose(out0, ref0, atol=2e-4, rtol=2e-4)
    assert jnp.allclose(out1, ref1, atol=2e-4, rtol=2e-4)
    print("KERNEL_OK")
</pallas_src>

<mosaic_0001>
module attributes {stable_mosaic.version = 11 : i64} {
  func.func @_conv_affine_relu_kernel(%arg0: i32, %arg1: i32, %arg2: memref<1x36x64xf32, #tpu.memory_space<vmem>>, %arg3: memref<4x36xf32, #tpu.memory_space<vmem>>, %arg4: memref<4x1xf32, #tpu.memory_space<vmem>>, %arg5: memref<4x1xf32, #tpu.memory_space<vmem>>, %arg6: memref<1x4x64xf32, #tpu.memory_space<vmem>>) attributes {dimension_semantics = [#tpu.dimension_semantics<parallel>, #tpu.dimension_semantics<parallel>], iteration_bounds = array<i64: 2, 1>, scalar_prefetch = 0 : i64, scratch_operands = 0 : i64, tpu.core_type = #tpu.core_type<tc>, window_params = [{transform_indices = @transform_0, window_bounds = array<i64: 1, 36, 64>}, {pipeline_mode = #tpu.pipeline_mode<synchronous>, transform_indices = @transform_1, window_bounds = array<i64: 4, 36>}, {pipeline_mode = #tpu.pipeline_mode<synchronous>, transform_indices = @transform_2, window_bounds = array<i64: 4, 1>}, {pipeline_mode = #tpu.pipeline_mode<synchronous>, transform_indices = @transform_3, window_bounds = array<i64: 4, 1>}, {transform_indices = @transform_4, window_bounds = array<i64: 1, 4, 64>}]} {
    %c0 = arith.constant 0 : index
    %c0_0 = arith.constant 0 : index
    %0 = vector.load %arg3[%c0, %c0_0] : memref<4x36xf32, #tpu.memory_space<vmem>>, vector<4x36xf32>
    %c0_1 = arith.constant 0 : index
    %c0_2 = arith.constant 0 : index
    %c0_3 = arith.constant 0 : index
    %1 = vector.load %arg2[%c0_1, %c0_2, %c0_3] : memref<1x36x64xf32, #tpu.memory_space<vmem>>, vector<1x36x64xf32>
    %2 = vector.shape_cast %1 : vector<1x36x64xf32> to vector<36x64xf32>
    %cst = arith.constant dense<0.000000e+00> : vector<4x64xf32>
    %3 = tpu.matmul %0, %2, %cst {dimension_numbers = #tpu.dot_dimension_numbers<[1], [0], [0], [1], [0, 0, 1, 1], [], []>} : vector<4x36xf32>, vector<36x64xf32>, vector<4x64xf32> -> vector<4x64xf32>
    %c0_4 = arith.constant 0 : index
    %c0_5 = arith.constant 0 : index
    %4 = vector.load %arg4[%c0_4, %c0_5] : memref<4x1xf32, #tpu.memory_space<vmem>>, vector<4x1xf32>
    %5 = vector.broadcast %4 : vector<4x1xf32> to vector<4x64xf32>
    %6 = arith.mulf %3, %5 : vector<4x64xf32>
    %c0_6 = arith.constant 0 : index
    %c0_7 = arith.constant 0 : index
    %7 = vector.load %arg5[%c0_6, %c0_7] : memref<4x1xf32, #tpu.memory_space<vmem>>, vector<4x1xf32>
    %8 = vector.broadcast %7 : vector<4x1xf32> to vector<4x64xf32>
    %9 = arith.addf %6, %8 : vector<4x64xf32>
    %cst_8 = arith.constant 0.000000e+00 : f32
    %10 = vector.broadcast %cst_8 : f32 to vector<4x64xf32>
    %11 = arith.maximumf %9, %10 : vector<4x64xf32>
    %c0_9 = arith.constant 0 : index
    %c0_10 = arith.constant 0 : index
    %c0_11 = arith.constant 0 : index
    %12 = vector.load %arg6[%c0_9, %c0_10, %c0_11] : memref<1x4x64xf32, #tpu.memory_space<vmem>>, vector<1x4x64xf32>
    %13 = vector.shape_cast %12 : vector<1x4x64xf32> to vector<4x64xf32>
    %14 = vector.shape_cast %11 : vector<4x64xf32> to vector<1x4x64xf32>
    tpu.vector_store %arg6[%c0_9, %c0_10, %c0_11], %14 {strides = array<i32>} : memref<1x4x64xf32, #tpu.memory_space<vmem>>, vector<1x4x64xf32>,
    return
  }
  func.func @transform_0(%arg0: i32, %arg1: i32) -> (i32, i32, i32) {
    %c0_i32 = arith.constant 0 : i32
    %c0_i32_0 = arith.constant 0 : i32
    return %arg0, %c0_i32, %arg1 : i32, i32, i32
  }
  func.func @transform_1(%arg0: i32, %arg1: i32) -> (i32, i32) {
    %c0_i32 = arith.constant 0 : i32
    %c0_i32_0 = arith.constant 0 : i32
    %c0_i32_1 = arith.constant 0 : i32
    return %c0_i32, %c0_i32_0 : i32, i32
  }
  func.func @transform_2(%arg0: i32, %arg1: i32) -> (i32, i32) {
    %c0_i32 = arith.constant 0 : i32
    %c0_i32_0 = arith.constant 0 : i32
    %c0_i32_1 = arith.constant 0 : i32
    return %c0_i32, %c0_i32_0 : i32, i32
  }
  func.func @transform_3(%arg0: i32, %arg1: i32) -> (i32, i32) {
    %c0_i32 = arith.constant 0 : i32
    %c0_i32_0 = arith.constant 0 : i32
    %c0_i32_1 = arith.constant 0 : i32
    return %c0_i32, %c0_i32_0 : i32, i32
  }
  func.func @transform_4(%arg0: i32, %arg1: i32) -> (i32, i32, i32) {
    %c0_i32 = arith.constant 0 : i32
    %c0_i32_0 = arith.constant 0 : i32
    return %arg0, %c0_i32, %arg1 : i32, i32, i32
  }
}

module attributes {stable_mosaic.version = 11 : i64} {
  func.func @_max4_kernel(%arg0: i32, %arg1: i32, %arg2: memref<1x4x64xf32, #tpu.memory_space<vmem>>, %arg3: memref<1x4x64xf32, #tpu.memory_space<vmem>>, %arg4: memref<1x4x64xf32, #tpu.memory_space<vmem>>, %arg5: memref<1x4x64xf32, #tpu.memory_space<vmem>>, %arg6: memref<1x4x64xf32, #tpu.memory_space<vmem>>) attributes {dimension_semantics = [#tpu.dimension_semantics<parallel>, #tpu.dimension_semantics<parallel>], iteration_bounds = array<i64: 2, 1>, scalar_prefetch = 0 : i64, scratch_operands = 0 : i64, tpu.core_type = #tpu.core_type<tc>, window_params = [{transform_indices = @transform_0, window_bounds = array<i64: 1, 4, 64>}, {transform_indices = @transform_1, window_bounds = array<i64: 1, 4, 64>}, {transform_indices = @transform_2, window_bounds = array<i64: 1, 4, 64>}, {transform_indices = @transform_3, window_bounds = array<i64: 1, 4, 64>}, {transform_indices = @transform_4, window_bounds = array<i64: 1, 4, 64>}]} {
    %c0 = arith.constant 0 : index
    %c0_0 = arith.constant 0 : index
    %c0_1 = arith.constant 0 : index
    %0 = vector.load %arg2[%c0, %c0_0, %c0_1] : memref<1x4x64xf32, #tpu.memory_space<vmem>>, vector<1x4x64xf32>
    %c0_2 = arith.constant 0 : index
    %c0_3 = arith.constant 0 : index
    %c0_4 = arith.constant 0 : index
    %1 = vector.load %arg3[%c0_2, %c0_3, %c0_4] : memref<1x4x64xf32, #tpu.memory_space<vmem>>, vector<1x4x64xf32>
    %2 = arith.maximumf %0, %1 : vector<1x4x64xf32>
    %c0_5 = arith.constant 0 : index
    %c0_6 = arith.constant 0 : index
    %c0_7 = arith.constant 0 : index
    %3 = vector.load %arg4[%c0_5, %c0_6, %c0_7] : memref<1x4x64xf32, #tpu.memory_space<vmem>>, vector<1x4x64xf32>
    %c0_8 = arith.constant 0 : index
    %c0_9 = arith.constant 0 : index
    %c0_10 = arith.constant 0 : index
    %4 = vector.load %arg5[%c0_8, %c0_9, %c0_10] : memref<1x4x64xf32, #tpu.memory_space<vmem>>, vector<1x4x64xf32>
    %5 = arith.maximumf %3, %4 : vector<1x4x64xf32>
    %6 = arith.maximumf %2, %5 : vector<1x4x64xf32>
    %c0_11 = arith.constant 0 : index
    %c0_12 = arith.constant 0 : index
    %c0_13 = arith.constant 0 : index
    %7 = vector.load %arg6[%c0_11, %c0_12, %c0_13] : memref<1x4x64xf32, #tpu.memory_space<vmem>>, vector<1x4x64xf32>
    tpu.vector_store %arg6[%c0_11, %c0_12, %c0_13], %6 {strides = array<i32>} : memref<1x4x64xf32, #tpu.memory_space<vmem>>, vector<1x4x64xf32>,
    return
  }
  func.func @transform_0(%arg0: i32, %arg1: i32) -> (i32, i32, i32) {
    %c0_i32 = arith.constant 0 : i32
    %c0_i32_0 = arith.constant 0 : i32
    return %arg0, %c0_i32, %arg1 : i32, i32, i32
  }
  func.func @transform_1(%arg0: i32, %arg1: i32) -> (i32, i32, i32) {
    %c0_i32 = arith.constant 0 : i32
    %c0_i32_0 = arith.constant 0 : i32
    return %arg0, %c0_i32, %arg1 : i32, i32, i32
  }
  func.func @transform_2(%arg0: i32, %arg1: i32) -> (i32, i32, i32) {
    %c0_i32 = arith.constant 0 : i32
    %c0_i32_0 = arith.constant 0 : i32
    return %arg0, %c0_i32, %arg1 : i32, i32, i32
  }
  func.func @transform_3(%arg0: i32, %arg1: i32) -> (i32, i32, i32) {
    %c0_i32 = arith.constant 0 : i32
    %c0_i32_0 = arith.constant 0 : i32
    return %arg0, %c0_i32, %arg1 : i32, i32, i32
  }
  func.func @transform_4(%arg0: i32, %arg1: i32) -> (i32, i32, i32) {
    %c0_i32 = arith.constant 0 : i32
    %c0_i32_0 = arith.constant 0 : i32
    return %arg0, %c0_i32, %arg1 : i32, i32, i32
  }
}

module attributes {stable_mosaic.version = 11 : i64} {
  func.func @_dualconv_affine_relu_kernel(%arg0: i32, %arg1: i32, %arg2: memref<1x36x64xf32, #tpu.memory_space<vmem>>, %arg3: memref<1x36x64xf32, #tpu.memory_space<vmem>>, %arg4: memref<8x36xf32, #tpu.memory_space<vmem>>, %arg5: memref<8x36xf32, #tpu.memory_space<vmem>>, %arg6: memref<8x1xf32, #tpu.memory_space<vmem>>, %arg7: memref<8x1xf32, #tpu.memory_space<vmem>>, %arg8: memref<1x8x64xf32, #tpu.memory_space<vmem>>) attributes {dimension_semantics = [#tpu.dimension_semantics<parallel>, #tpu.dimension_semantics<parallel>], iteration_bounds = array<i64: 2, 1>, scalar_prefetch = 0 : i64, scratch_operands = 0 : i64, tpu.core_type = #tpu.core_type<tc>, window_params = [{transform_indices = @transform_0, window_bounds = array<i64: 1, 36, 64>}, {transform_indices = @transform_1, window_bounds = array<i64: 1, 36, 64>}, {pipeline_mode = #tpu.pipeline_mode<synchronous>, transform_indices = @transform_2, window_bounds = array<i64: 8, 36>}, {pipeline_mode = #tpu.pipeline_mode<synchronous>, transform_indices = @transform_3, window_bounds = array<i64: 8, 36>}, {pipeline_mode = #tpu.pipeline_mode<synchronous>, transform_indices = @transform_4, window_bounds = array<i64: 8, 1>}, {pipeline_mode = #tpu.pipeline_mode<synchronous>, transform_indices = @transform_5, window_bounds = array<i64: 8, 1>}, {transform_indices = @transform_6, window_bounds = array<i64: 1, 8, 64>}]} {
    %c0 = arith.constant 0 : index
    %c0_0 = arith.constant 0 : index
    %0 = vector.load %arg4[%c0, %c0_0] : memref<8x36xf32, #tpu.memory_space<vmem>>, vector<8x36xf32>
    %c0_1 = arith.constant 0 : index
    %c0_2 = arith.constant 0 : index
    %c0_3 = arith.constant 0 : index
    %1 = vector.load %arg2[%c0_1, %c0_2, %c0_3] : memref<1x36x64xf32, #tpu.memory_space<vmem>>, vector<1x36x64xf32>
    %2 = vector.shape_cast %1 : vector<1x36x64xf32> to vector<36x64xf32>
    %cst = arith.constant dense<0.000000e+00> : vector<8x64xf32>
    %3 = tpu.matmul %0, %2, %cst {dimension_numbers = #tpu.dot_dimension_numbers<[1], [0], [0], [1], [0, 0, 1, 1], [], []>} : vector<8x36xf32>, vector<36x64xf32>, vector<8x64xf32> -> vector<8x64xf32>
    %c0_4 = arith.constant 0 : index
    %c0_5 = arith.constant 0 : index
    %4 = vector.load %arg5[%c0_4, %c0_5] : memref<8x36xf32, #tpu.memory_space<vmem>>, vector<8x36xf32>
    %c0_6 = arith.constant 0 : index
    %c0_7 = arith.constant 0 : index
    %c0_8 = arith.constant 0 : index
    %5 = vector.load %arg3[%c0_6, %c0_7, %c0_8] : memref<1x36x64xf32, #tpu.memory_space<vmem>>, vector<1x36x64xf32>
    %6 = vector.shape_cast %5 : vector<1x36x64xf32> to vector<36x64xf32>
    %cst_9 = arith.constant dense<0.000000e+00> : vector<8x64xf32>
    %7 = tpu.matmul %4, %6, %cst_9 {dimension_numbers = #tpu.dot_dimension_numbers<[1], [0], [0], [1], [0, 0, 1, 1], [], []>} : vector<8x36xf32>, vector<36x64xf32>, vector<8x64xf32> -> vector<8x64xf32>
    %8 = arith.addf %3, %7 : vector<8x64xf32>
    %c0_10 = arith.constant 0 : index
    %c0_11 = arith.constant 0 : index
    %9 = vector.load %arg6[%c0_10, %c0_11] : memref<8x1xf32, #tpu.memory_space<vmem>>, vector<8x1xf32>
    %10 = vector.broadcast %9 : vector<8x1xf32> to vector<8x64xf32>
    %11 = arith.mulf %8, %10 : vector<8x64xf32>
    %c0_12 = arith.constant 0 : index
    %c0_13 = arith.constant 0 : index
    %12 = vector.load %arg7[%c0_12, %c0_13] : memref<8x1xf32, #tpu.memory_space<vmem>>, vector<8x1xf32>
    %13 = vector.broadcast %12 : vector<8x1xf32> to vector<8x64xf32>
    %14 = arith.addf %11, %13 : vector<8x64xf32>
    %cst_14 = arith.constant 0.000000e+00 : f32
    %15 = vector.broadcast %cst_14 : f32 to vector<8x64xf32>
    %16 = arith.maximumf %14, %15 : vector<8x64xf32>
    %c0_15 = arith.constant 0 : index
    %c0_16 = arith.constant 0 : index
    %c0_17 = arith.constant 0 : index
    %17 = vector.load %arg8[%c0_15, %c0_16, %c0_17] : memref<1x8x64xf32, #tpu.memory_space<vmem>>, vector<1x8x64xf32>
    %18 = vector.shape_cast %17 : vector<1x8x64xf32> to vector<8x64xf32>
    %19 = vector.shape_cast %16 : vector<8x64xf32> to vector<1x8x64xf32>
    tpu.vector_store %arg8[%c0_15, %c0_16, %c0_17], %19 {strides = array<i32>} : memref<1x8x64xf32, #tpu.memory_space<vmem>>, vector<1x8x64xf32>,
    return
  }
  func.func @transform_0(%arg0: i32, %arg1: i32) -> (i32, i32, i32) {
    %c0_i32 = arith.constant 0 : i32
    %c0_i32_0 = arith.constant 0 : i32
    return %arg0, %c0_i32, %arg1 : i32, i32, i32
  }
  func.func @transform_1(%arg0: i32, %arg1: i32) -> (i32, i32, i32) {
    %c0_i32 = arith.constant 0 : i32
    %c0_i32_0 = arith.constant 0 : i32
    return %arg0, %c0_i32, %arg1 : i32, i32, i32
  }
  func.func @transform_2(%arg0: i32, %arg1: i32) -> (i32, i32) {
    %c0_i32 = arith.constant 0 : i32
    %c0_i32_0 = arith.constant 0 : i32
    %c0_i32_1 = arith.constant 0 : i32
    return %c0_i32, %c0_i32_0 : i32, i32
  }
  func.func @transform_3(%arg0: i32, %arg1: i32) -> (i32, i32) {
    %c0_i32 = arith.constant 0 : i32
    %c0_i32_0 = arith.constant 0 : i32
    %c0_i32_1 = arith.constant 0 : i32
    return %c0_i32, %c0_i32_0 : i32, i32
  }
  func.func @transform_4(%arg0: i32, %arg1: i32) -> (i32, i32) {
    %c0_i32 = arith.constant 0 : i32
    %c0_i32_0 = arith.constant 0 : i32
    %c0_i32_1 = arith.constant 0 : i32
    return %c0_i32, %c0_i32_0 : i32, i32
  }
  func.func @transform_5(%arg0: i32, %arg1: i32) -> (i32, i32) {
    %c0_i32 = arith.constant 0 : i32
    %c0_i32_0 = arith.constant 0 : i32
    %c0_i32_1 = arith.constant 0 : i32
    return %c0_i32, %c0_i32_0 : i32, i32
  }
  func.func @transform_6(%arg0: i32, %arg1: i32) -> (i32, i32, i32) {
    %c0_i32 = arith.constant 0 : i32
    %c0_i32_0 = arith.constant 0 : i32
    return %arg0, %c0_i32, %arg1 : i32, i32, i32
  }
}

module attributes {stable_mosaic.version = 11 : i64} {
  func.func @_conv_affine_relu_kernel(%arg0: i32, %arg1: i32, %arg2: memref<1x72x64xf32, #tpu.memory_space<vmem>>, %arg3: memref<16x72xf32, #tpu.memory_space<vmem>>, %arg4: memref<16x1xf32, #tpu.memory_space<vmem>>, %arg5: memref<16x1xf32, #tpu.memory_space<vmem>>, %arg6: memref<1x16x64xf32, #tpu.memory_space<vmem>>) attributes {dimension_semantics = [#tpu.dimension_semantics<parallel>, #tpu.dimension_semantics<parallel>], iteration_bounds = array<i64: 2, 1>, scalar_prefetch = 0 : i64, scratch_operands = 0 : i64, tpu.core_type = #tpu.core_type<tc>, window_params = [{transform_indices = @transform_0, window_bounds = array<i64: 1, 72, 64>}, {pipeline_mode = #tpu.pipeline_mode<synchronous>, transform_indices = @transform_1, window_bounds = array<i64: 16, 72>}, {pipeline_mode = #tpu.pipeline_mode<synchronous>, transform_indices = @transform_2, window_bounds = array<i64: 16, 1>}, {pipeline_mode = #tpu.pipeline_mode<synchronous>, transform_indices = @transform_3, window_bounds = array<i64: 16, 1>}, {transform_indices = @transform_4, window_bounds = array<i64: 1, 16, 64>}]} {
    %c0 = arith.constant 0 : index
    %c0_0 = arith.constant 0 : index
    %0 = vector.load %arg3[%c0, %c0_0] : memref<16x72xf32, #tpu.memory_space<vmem>>, vector<16x72xf32>
    %c0_1 = arith.constant 0 : index
    %c0_2 = arith.constant 0 : index
    %c0_3 = arith.constant 0 : index
    %1 = vector.load %arg2[%c0_1, %c0_2, %c0_3] : memref<1x72x64xf32, #tpu.memory_space<vmem>>, vector<1x72x64xf32>
    %2 = vector.shape_cast %1 : vector<1x72x64xf32> to vector<72x64xf32>
    %cst = arith.constant dense<0.000000e+00> : vector<16x64xf32>
    %3 = tpu.matmul %0, %2, %cst {dimension_numbers = #tpu.dot_dimension_numbers<[1], [0], [0], [1], [0, 0, 1, 1], [], []>} : vector<16x72xf32>, vector<72x64xf32>, vector<16x64xf32> -> vector<16x64xf32>
    %c0_4 = arith.constant 0 : index
    %c0_5 = arith.constant 0 : index
    %4 = vector.load %arg4[%c0_4, %c0_5] : memref<16x1xf32, #tpu.memory_space<vmem>>, vector<16x1xf32>
    %5 = vector.broadcast %4 : vector<16x1xf32> to vector<16x64xf32>
    %6 = arith.mulf %3, %5 : vector<16x64xf32>
    %c0_6 = arith.constant 0 : index
    %c0_7 = arith.constant 0 : index
    %7 = vector.load %arg5[%c0_6, %c0_7] : memref<16x1xf32, #tpu.memory_space<vmem>>, vector<16x1xf32>
    %8 = vector.broadcast %7 : vector<16x1xf32> to vector<16x64xf32>
    %9 = arith.addf %6, %8 : vector<16x64xf32>
    %cst_8 = arith.constant 0.000000e+00 : f32
    %10 = vector.broadcast %cst_8 : f32 to vector<16x64xf32>
    %11 = arith.maximumf %9, %10 : vector<16x64xf32>
    %c0_9 = arith.constant 0 : index
    %c0_10 = arith.constant 0 : index
    %c0_11 = arith.constant 0 : index
    %12 = vector.load %arg6[%c0_9, %c0_10, %c0_11] : memref<1x16x64xf32, #tpu.memory_space<vmem>>, vector<1x16x64xf32>
    %13 = vector.shape_cast %12 : vector<1x16x64xf32> to vector<16x64xf32>
    %14 = vector.shape_cast %11 : vector<16x64xf32> to vector<1x16x64xf32>
    tpu.vector_store %arg6[%c0_9, %c0_10, %c0_11], %14 {strides = array<i32>} : memref<1x16x64xf32, #tpu.memory_space<vmem>>, vector<1x16x64xf32>,
    return
  }
  func.func @transform_0(%arg0: i32, %arg1: i32) -> (i32, i32, i32) {
    %c0_i32 = arith.constant 0 : i32
    %c0_i32_0 = arith.constant 0 : i32
    return %arg0, %c0_i32, %arg1 : i32, i32, i32
  }
  func.func @transform_1(%arg0: i32, %arg1: i32) -> (i32, i32) {
    %c0_i32 = arith.constant 0 : i32
    %c0_i32_0 = arith.constant 0 : i32
    %c0_i32_1 = arith.constant 0 : i32
    return %c0_i32, %c0_i32_0 : i32, i32
  }
  func.func @transform_2(%arg0: i32, %arg1: i32) -> (i32, i32) {
    %c0_i32 = arith.constant 0 : i32
    %c0_i32_0 = arith.constant 0 : i32
    %c0_i32_1 = arith.constant 0 : i32
    return %c0_i32, %c0_i32_0 : i32, i32
  }
  func.func @transform_3(%arg0: i32, %arg1: i32) -> (i32, i32) {
    %c0_i32 = arith.constant 0 : i32
    %c0_i32_0 = arith.constant 0 : i32
    %c0_i32_1 = arith.constant 0 : i32
    return %c0_i32, %c0_i32_0 : i32, i32
  }
  func.func @transform_4(%arg0: i32, %arg1: i32) -> (i32, i32, i32) {
    %c0_i32 = arith.constant 0 : i32
    %c0_i32_0 = arith.constant 0 : i32
    return %arg0, %c0_i32, %arg1 : i32, i32, i32
  }
}

</mosaic_0001>

<bundles_post_ra>
// kernel: fgdownv1_forward.5
= control target key start
LH: loop header
LB: loop body
LE: loop exit
PB: predicated region body
PF: predicated region fallthrough
CT: control target
= control target key end

     0   :  { %s524_s15 = smov 0   ;;  %s526_s16 = smov 0   ;;  %s570_s0 = inlined_call_operand.vmem [shape: f32[2,36,64], index: 0, kind: input, shape index: {}]   ;;  %s571_s1 = inlined_call_operand.vmem [shape: f32[4,36], index: 1, kind: input, shape index: {}]   ;;  %s572_s2 = inlined_call_operand.vmem [shape: f32[4,1], index: 2, kind: input, shape index: {}]   ;;  %s573_s3 = inlined_call_operand.vmem [shape: f32[4,1], index: 3, kind: input, shape index: {}]   ;;  %s574_s4 = inlined_call_operand.vmem [shape: f32[2,4,64], index: 4, kind: output, shape index: {}]  }
   0x1   :  { %s528_s17 = smov 0  }
   0x2 LB: > { %s26_s18 = sadd.s32 1, %s489_s16  ;;  %p409_p0 = scmp.ge.s32.totalorder %s493_s17, 1  ;;  %s493_s17 = sphi %s528_s17, %s14_s17   ;;  %s489_s16 = sphi %s526_s16, %s576_s16   ;;  %s485_s15 = sphi %s524_s15, %s575_s15  }
   0x3   : > { %p28_p1 = scmp.ge.s32.totalorder %s26_s18, 2  ;;  %p181_p2 = scmp.lt.s32.totalorder %s493_s17, 3 }
   0x5   : > { %s578_s18 = smov (%p28_p1, %s26_s18), 0  ;;  %p182_p3 = pnand %p409_p0, %p181_p2 }
   0x6   : > { %p212_p4 = scmp.lt.s32.totalorder (!%p182_p3), %s485_s15, 1  ;;  %v495_v0 = vmov (!%p182_p3), 0.0|0.0   ;;  %vm496_vm0 = vmmov (!%p182_p3), 0   ;;  %v497_v1 = vmov (!%p182_p3), 0.0   ;;  %v311_v2 = vld [vmem:[%s572_s2] sm:$0xf] (!%p182_p3) }
   0x7   : > { %185 = sbr.rel (%p182_p3) target bundleno = 249 (0xf9), region = 36  ;;  %435 = vmatprep.subr.bf16.mxu0 (!%p182_p3), %v495_v0  ;;  %432 = vmatprep.mubr.msk.f32.mxu0 (!%p182_p3), %vm496_vm0, %v497_v1  ;;  %v498_v3 = vmov (!%p182_p3), 0   ;;  %v318_v4 = vld [vmem:[%s573_s3] sm:$0xf] (!%p182_p3)  ;;  %vm237_vm1 = vcmask (!%p182_p3), 1043456   ;;  %vm233_vm2 = vcmask (!%p182_p3), 293888  }
   0x8   : > { %470 = vset.pattern.permute.xlu0 (!%p182_p3), %v498_v3  ;;  %v227_v12 = vld [vmem:[%s571_s1] sm:$0xf] (!%p182_p3)  ;;  %vm326_vm3 = vcmask (!%p182_p3), 519168  }
   0x9   : > { %314 = vperm.xlu0 (!%p182_p3), %470, %v311_v2  }
   0xd   : > { %321 = vperm.xlu0 (!%p182_p3), %470, %v318_v4  }
   0xe   : > { %s580_s15 = smov (!%p212_p4, %s485_s15), 1 }
   0xf   : > { %s441_s21 = smul.u32 40, %s580_s15  ;;  %s411_s29 = sshll.u32 %s580_s15, 2 }
  0x10   : > { %s226_s6 = scalar_lea.vmem %s574_s4, %s411_s29 }
  0x11   : > { %s219_s26 = scalar_lea.vmem %s570_s0, %s441_s21 }
  0x12   : > { %v228_v5 = vld [vmem:[%s219_s26] sm:$0xff]  ;;  %v229_v6 = vld [vmem:[%s219_s26 + $0x8] sm:$0xff]  ;;  %v230_v7 = vld [vmem:[%s219_s26 + $0x10] sm:$0xff] }
  0x13   : > { %v436_v8 = vpack.c.bf16 %v229_v6, %v228_v5  ;;  %v231_v9 = vld [vmem:[%s219_s26 + $0x18] sm:$0xff]  ;;  %v232_v11 = vld [vmem:[%s219_s26 + $0x20] sm:$0xf] }
  0x14   : > { %v439_v10 = vpack.c.bf16 %v231_v9, %v230_v7 }
  0x15   : > { %437 = vmatpush3.bf16.msra.mxu0 %v436_v8 }
  0x16   : > { %438 = vmatprep.subr.bf16.mxu0 %v495_v0 }
  0x19   : > { %440 = vmatpush3.bf16.msra.mxu0 %v439_v10 }
  0x1a   : > { %430 = vmatprep.subr.mxu0 %v497_v1 }
  0x1d   : > { %431 = vmatpush3.msk.msra.mxu0 %vm237_vm1, %v232_v11 }
  0x1e   : > { %433 = vmatmul.mubr.msk.f32.vlgmr.msra.gmra.mrb[0].mxu0 %vm233_vm2, %v227_v12 }
  0x88   : > { %v315_v13 = vpop.permute.xlu0 %314 }
  0x8c   : > { %v322_v17 = vpop.permute.xlu0 %321 }
  0xf1   : > { %v307_v14 = vpop.f32.mrb[0].mxu0 }
  0xf2   : > { %v317_v15 = vmul.f32 %v315_v13, %v307_v14  ;;  %v434_v16 = vpop.f32.mrb[1].mxu0 }
  0xf4   : > { %v324_v18 = vadd.f32 %v322_v17, %v317_v15 }
  0xf6   : > { %v325_v19 = vmax.f32 %v324_v18, 0.0 }
  0xf8   : > { %327 = vst.msk [vmem:[%s226_s6] sm:$0xf] %vm326_vm3, %v325_v19 }
  0xf9 PF: > { %s14_s17 = sadd.s32 1, %s493_s17   ;;  %s575_s15 = smov %s489_s16 }
  0xfa   : > { %p11_p5 = scmp.ge.s32.totalorder %s14_s17, 4   ;;  %s576_s16 = smov %s578_s18 }
  0xfc   :  { %13 = sbr.rel (!%p11_p5) target bundleno = 2 (0x2), region = 66 }

// kernel: fgdownv1_forward.4
= control target key start
LH: loop header
LB: loop body
LE: loop exit
PB: predicated region body
PF: predicated region fallthrough
CT: control target
= control target key end

     0   :  { %s521_s15 = smov 0   ;;  %s523_s16 = smov 0   ;;  %s556_s0 = inlined_call_operand.vmem [shape: f32[2,4,64], index: 0, kind: input, shape index: {}]   ;;  %s557_s1 = inlined_call_operand.vmem [shape: f32[2,4,64], index: 1, kind: input, shape index: {}]   ;;  %s558_s2 = inlined_call_operand.vmem [shape: f32[2,4,64], index: 2, kind: input, shape index: {}]   ;;  %s559_s3 = inlined_call_operand.vmem [shape: f32[2,4,64], index: 3, kind: input, shape index: {}]   ;;  %s560_s4 = inlined_call_operand.vmem [shape: f32[2,4,64], index: 4, kind: output, shape index: {}]  }
   0x1   :  { %s525_s17 = smov 0  }
   0x2 LB: > { %s26_s18 = sadd.s32 1, %s490_s16  ;;  %p440_p0 = scmp.ge.s32.totalorder %s494_s17, 1  ;;  %s494_s17 = sphi %s525_s17, %s14_s17   ;;  %s490_s16 = sphi %s523_s16, %s562_s16   ;;  %s486_s15 = sphi %s521_s15, %s561_s15  }
   0x3   : > { %p28_p1 = scmp.ge.s32.totalorder %s26_s18, 2  ;;  %p222_p2 = scmp.lt.s32.totalorder %s494_s17, 3 }
   0x5   : > { %s564_s18 = smov (%p28_p1, %s26_s18), 0  ;;  %p223_p3 = pnand %p440_p0, %p222_p2 }
   0x6   : > { %p273_p4 = scmp.lt.s32.totalorder (!%p223_p3), %s486_s15, 1  ;;  %vm315_vm0 = vcmask (!%p223_p3), 519168  }
   0x7   : > { %226 = sbr.rel (%p223_p3) target bundleno = 26 (0x1a), region = 36 }
   0xe   : > { %s566_s15 = smov (!%p273_p4, %s486_s15), 1 }
   0xf   : > { %s441_s19 = sshll.u32 %s566_s15, 2 }
  0x10   : > { %s279_s22 = scalar_lea.vmem %s556_s0, %s441_s19  ;;  %s286_s25 = scalar_lea.vmem %s557_s1, %s441_s19 }
  0x11   : > { %s293_s28 = scalar_lea.vmem %s558_s2, %s441_s19  ;;  %s300_s5 = scalar_lea.vmem %s559_s3, %s441_s19  ;;  %v308_v0 = vld [vmem:[%s279_s22] sm:$0xf] }
  0x12   : > { %v309_v1 = vld [vmem:[%s286_s25] sm:$0xf]  ;;  %s307_s8 = scalar_lea.vmem %s560_s4, %s441_s19 }
  0x13   : > { %v310_v2 = vmax.f32 %v308_v0, %v309_v1  ;;  %v311_v3 = vld [vmem:[%s293_s28] sm:$0xf] }
  0x14   : > { %v312_v4 = vld [vmem:[%s300_s5] sm:$0xf] }
  0x15   : > { %v313_v5 = vmax.f32 %v311_v3, %v312_v4 }
  0x17   : > { %v314_v6 = vmax.f32 %v310_v2, %v313_v5 }
  0x19   : > { %316 = vst.msk [vmem:[%s307_s8] sm:$0xf] %vm315_vm0, %v314_v6 }
  0x1a PF: > { %s14_s17 = sadd.s32 1, %s494_s17   ;;  %s561_s15 = smov %s490_s16 }
  0x1b   : > { %p11_p5 = scmp.ge.s32.totalorder %s14_s17, 4   ;;  %s562_s16 = smov %s564_s18 }
  0x1d   :  { %13 = sbr.rel (!%p11_p5) target bundleno = 2 (0x2), region = 75 }

// kernel: fgdownv1_forward.6
= control target key start
LH: loop header
LB: loop body
LE: loop exit
PB: predicated region body
PF: predicated region fallthrough
CT: control target
= control target key end

     0   :  { %s748_s21 = smov 0   ;;  %s750_s22 = smov 0   ;;  %s800_s0 = inlined_call_operand.vmem [shape: f32[2,36,64], index: 0, kind: input, shape index: {}]   ;;  %s801_s1 = inlined_call_operand.vmem [shape: f32[2,36,64], index: 1, kind: input, shape index: {}]   ;;  %s802_s2 = inlined_call_operand.vmem [shape: f32[8,36], index: 2, kind: input, shape index: {}]   ;;  %s803_s3 = inlined_call_operand.vmem [shape: f32[8,36], index: 3, kind: input, shape index: {}]   ;;  %s804_s4 = inlined_call_operand.vmem [shape: f32[8,1], index: 4, kind: input, shape index: {}]   ;;  %s805_s5 = inlined_call_operand.vmem [shape: f32[8,1], index: 5, kind: input, shape index: {}]   ;;  %s806_s6 = inlined_call_operand.vmem [shape: f32[2,8,64], index: 6, kind: output, shape index: {}]  }
   0x1   :  { %s752_s23 = smov 0  }
   0x2 LB: > { %s28_s24 = sadd.s32 1, %s703_s22  ;;  %p594_p0 = scmp.ge.s32.totalorder %s707_s23, 1  ;;  %s707_s23 = sphi %s752_s23, %s16_s23   ;;  %s703_s22 = sphi %s750_s22, %s808_s22   ;;  %s699_s21 = sphi %s748_s21, %s807_s21  }
   0x3   : > { %p30_p1 = scmp.ge.s32.totalorder %s28_s24, 2  ;;  %p246_p2 = scmp.lt.s32.totalorder %s707_s23, 3 }
   0x5   : > { %s810_s24 = smov (%p30_p1, %s28_s24), 0  ;;  %p247_p3 = pnand %p594_p0, %p246_p2 }
   0x6   : > { %p289_p4 = scmp.lt.s32.totalorder (!%p247_p3), %s699_s21, 1  ;;  %v709_v0 = vmov (!%p247_p3), 0.0|0.0   ;;  %v478_v1 = vld [vmem:[%s804_s4] sm:$0xff] (!%p247_p3)  ;;  %vm710_vm0 = vmmov (!%p247_p3), 0   ;;  %v711_v2 = vmov (!%p247_p3), 0.0   ;;  %v712_v3 = vmov (!%p247_p3), 0  }
   0x7   : > { %250 = sbr.rel (%p247_p3) target bundleno = 252 (0xfc), region = 44  ;;  %642 = vmatprep.subr.bf16.mxu1 (!%p247_p3), %v709_v0  ;;  %648 = vmatprep.subr.bf16.mxu0 (!%p247_p3), %v709_v0  ;;  %v485_v4 = vld [vmem:[%s805_s5] sm:$0xff] (!%p247_p3)  ;;  %vm328_vm1 = vcmask (!%p247_p3), 1043456   ;;  %vm324_vm2 = vcmask (!%p247_p3), 293888   ;;  %vm493_vm3 = vcmask (!%p247_p3), 523264  }
   0x8   : > { %626 = vmatprep.mubr.msk.f32.mxu1 (!%p247_p3), %vm710_vm0, %v711_v2  ;;  %639 = vmatprep.mubr.msk.f32.mxu0 (!%p247_p3), %vm710_vm0, %v711_v2  ;;  %v318_v19 = vld [vmem:[%s803_s3] sm:$0xff] (!%p247_p3) }
   0x9   : > { %684 = vset.pattern.permute.xlu0 (!%p247_p3), %v712_v3  ;;  %v312_v20 = vld [vmem:[%s802_s2] sm:$0xff] (!%p247_p3) }
   0xa   : > { %481 = vperm.xlu0 (!%p247_p3), %684, %v478_v1  }
   0xe   : > { %s812_s21 = smov (!%p289_p4, %s699_s21), 1  ;;  %488 = vperm.xlu0 %684, %v485_v4  }
   0xf   : > { %s655_s27 = smul.u32 40, %s812_s21  ;;  %s597_s16 = sshll.u32 %s812_s21, 3 }
  0x10   : > { %s311_s19 = scalar_lea.vmem %s806_s6, %s597_s16 }
  0x11   : > { %s304_s8 = scalar_lea.vmem %s801_s1, %s655_s27  ;;  %s296_s11 = scalar_lea.vmem %s800_s0, %s655_s27 }
  0x12   : > { %v319_v5 = vld [vmem:[%s304_s8] sm:$0xff]  ;;  %v320_v6 = vld [vmem:[%s304_s8 + $0x8] sm:$0xff]  ;;  %v321_v10 = vld [vmem:[%s304_s8 + $0x10] sm:$0xff] }
  0x13   : > { %v313_v7 = vld [vmem:[%s296_s11] sm:$0xff]  ;;  %v643_v8 = vpack.c.bf16 %v320_v6, %v319_v5  ;;  %v314_v9 = vld [vmem:[%s296_s11 + $0x8] sm:$0xff]  ;;  %v322_v11 = vld [vmem:[%s304_s8 + $0x18] sm:$0xff] }
  0x14   : > { %v649_v12 = vpack.c.bf16 %v314_v9, %v313_v7  ;;  %v315_v13 = vld [vmem:[%s296_s11 + $0x10] sm:$0xff]  ;;  %v316_v14 = vld [vmem:[%s296_s11 + $0x18] sm:$0xff]  ;;  %v646_v15 = vpack.c.bf16 %v322_v11, %v321_v10  ;;  %v323_v17 = vld [vmem:[%s304_s8 + $0x20] sm:$0xf] }
  0x15   : > { %644 = vmatpush3.bf16.msra.mxu1 %v643_v8  ;;  %v652_v16 = vpack.c.bf16 %v316_v14, %v315_v13  ;;  %v317_v18 = vld [vmem:[%s296_s11 + $0x20] sm:$0xf] }
  0x16   : > { %650 = vmatpush3.bf16.msra.mxu0 %v649_v12  ;;  %645 = vmatprep.subr.bf16.mxu1 %v709_v0 }
  0x17   : > { %651 = vmatprep.subr.bf16.mxu0 %v709_v0 }
  0x19   : > { %647 = vmatpush3.bf16.msra.mxu1 %v646_v15 }
  0x1a   : > { %653 = vmatpush3.bf16.msra.mxu0 %v652_v16  ;;  %624 = vmatprep.subr.mxu1 %v711_v2 }
  0x1b   : > { %637 = vmatprep.subr.mxu0 %v711_v2 }
  0x1d   : > { %625 = vmatpush3.msk.msra.mxu1 %vm328_vm1, %v323_v17 }
  0x1e   : > { %638 = vmatpush3.msk.msra.mxu0 %vm328_vm1, %v317_v18  ;;  %627 = vmatmul.mubr.msk.f32.vlgmr.msra.gmra.mrb[0].mxu1 %vm324_vm2, %v318_v19 }
  0x1f   : > { %640 = vmatmul.mubr.msk.f32.vlgmr.msra.gmra.mrb[0].mxu0 %vm324_vm2, %v312_v20 }
  0x89   : > { %v482_v21 = vpop.permute.xlu0 %481 }
  0x8d   : > { %v489_v28 = vpop.permute.xlu0 %488 }
  0xf1   : > { %v398_v22 = vpop.f32.mrb[0].mxu1 }
  0xf2   : > { %v474_v23 = vpop.f32.mrb[0].mxu0  ;;  %v628_v24 = vpop.f32.mrb[1].mxu1 }
  0xf3   : > { %v475_v25 = vadd.f32 %v474_v23, %v398_v22  ;;  %v641_v26 = vpop.f32.mrb[1].mxu0 }
  0xf5   : > { %v484_v27 = vmul.f32 %v482_v21, %v475_v25 }
  0xf7   : > { %v491_v29 = vadd.f32 %v489_v28, %v484_v27 }
  0xf9   : > { %v492_v30 = vmax.f32 %v491_v29, 0.0 }
  0xfb   : > { %494 = vst.msk [vmem:[%s311_s19] sm:$0xff] %vm493_vm3, %v492_v30 }
  0xfc PF: > { %s16_s23 = sadd.s32 1, %s707_s23   ;;  %s807_s21 = smov %s703_s22 }
  0xfd   : > { %p13_p5 = scmp.ge.s32.totalorder %s16_s23, 4   ;;  %s808_s22 = smov %s810_s24 }
  0xff   :  { %15 = sbr.rel (!%p13_p5) target bundleno = 2 (0x2), region = 77 }

// kernel: fgdownv1_forward.7
= control target key start
LH: loop header
LB: loop body
LE: loop exit
PB: predicated region body
PF: predicated region fallthrough
CT: control target
= control target key end

     0   :  { %s577_s15 = smov 0   ;;  %s579_s16 = smov 0   ;;  %s634_s0 = inlined_call_operand.vmem [shape: f32[2,72,64], index: 0, kind: input, shape index: {}]   ;;  %s635_s1 = inlined_call_operand.vmem [shape: f32[16,72], index: 1, kind: input, shape index: {}]   ;;  %s636_s2 = inlined_call_operand.vmem [shape: f32[16,1], index: 2, kind: input, shape index: {}]   ;;  %s637_s3 = inlined_call_operand.vmem [shape: f32[16,1], index: 3, kind: input, shape index: {}]   ;;  %s638_s4 = inlined_call_operand.vmem [shape: f32[2,16,64], index: 4, kind: output, shape index: {}]  }
   0x1   :  { %s581_s17 = smov 0  }
   0x2 LB: > { %s26_s18 = sadd.s32 1, %s545_s16  ;;  %p442_p0 = scmp.ge.s32.totalorder %s549_s17, 1  ;;  %s549_s17 = sphi %s581_s17, %s14_s17   ;;  %s545_s16 = sphi %s579_s16, %s640_s16   ;;  %s541_s15 = sphi %s577_s15, %s639_s15  }
   0x3   : > { %p28_p1 = scmp.ge.s32.totalorder %s26_s18, 2  ;;  %p181_p2 = scmp.lt.s32.totalorder %s549_s17, 3 }
   0x5   : > { %s642_s18 = smov (%p28_p1, %s26_s18), 0  ;;  %p182_p3 = pnand %p442_p0, %p181_p2 }
   0x6   : > { %p213_p4 = scmp.lt.s32.totalorder (!%p182_p3), %s541_s15, 1  ;;  %v229_v0 = vld [vmem:[%s635_s1] sm:$0xff] (!%p182_p3)  ;;  %vm240_vm0 = vcmask (!%p182_p3), 588800   ;;  %v551_v2 = vmov (!%p182_p3), 0   ;;  %v323_v4 = vld [vmem:[%s636_s2 + $0x8] sm:$0xff] (!%p182_p3)  ;;  %vm352_vm1 = vcmask (!%p182_p3), 523264  }
   0x7   : > { %185 = sbr.rel (%p182_p3) target bundleno = 259 (0x103), region = 36  ;;  %v322_v1 = vld [vmem:[%s636_s2] sm:$0xff] (!%p182_p3)  ;;  %480 = vmatprep.mubr.msk.f32.mxu0 (!%p182_p3), %vm240_vm0, %v229_v0  ;;  %525 = vset.pattern.permute.xlu0 (!%p182_p3), %v551_v2  ;;  %v337_v5 = vld [vmem:[%s637_s3 + $0x8] sm:$0xff] (!%p182_p3) }
   0x8   : > { %v336_v3 = vld [vmem:[%s637_s3] sm:$0xff] (!%p182_p3)  ;;  %326 = vperm.xlu0 (!%p182_p3), %525, %v322_v1   ;;  %526 = vset.pattern.permute.xlu1 (!%p182_p3), %v551_v2  ;;  %v230_v19 = vld [vmem:[%s635_s1 + $0x8] sm:$0xff] (!%p182_p3) }
   0x9   : > { %340 = vperm.xlu1 (!%p182_p3), %526, %v336_v3  }
   0xc   : > { %331 = vperm.xlu0 (!%p182_p3), %525, %v323_v4  }
   0xd   : > { %345 = vperm.xlu1 (!%p182_p3), %526, %v337_v5  }
   0xe   : > { %s644_s15 = smov (!%p213_p4, %s541_s15), 1 }
   0xf   : > { %s499_s27 = smul.u32 72, %s644_s15  ;;  %s450_s9 = sshll.u32 %s644_s15, 4 }
  0x10   : > { %s228_s12 = scalar_lea.vmem %s638_s4, %s450_s9 }
  0x11   : > { %s220_s6 = scalar_lea.vmem %s634_s0, %s499_s27 }
  0x12   : > { %v231_v6 = vld [vmem:[%s220_s6] sm:$0xff]  ;;  %v232_v7 = vld [vmem:[%s220_s6 + $0x8] sm:$0xff]  ;;  %v233_v8 = vld [vmem:[%s220_s6 + $0x10] sm:$0xff] }
  0x13   : > { %v483_v9 = vpack.c.bf16 %v232_v7, %v231_v6  ;;  %v234_v10 = vld [vmem:[%s220_s6 + $0x18] sm:$0xff]  ;;  %v235_v12 = vld [vmem:[%s220_s6 + $0x20] sm:$0xff]  ;;  %v236_v13 = vld [vmem:[%s220_s6 + $0x28] sm:$0xff] }
  0x14   : > { %v487_v11 = vpack.c.bf16 %v234_v10, %v233_v8  ;;  %v491_v14 = vpack.c.bf16 %v236_v13, %v235_v12  ;;  %v237_v15 = vld [vmem:[%s220_s6 + $0x30] sm:$0xff]  ;;  %v238_v16 = vld [vmem:[%s220_s6 + $0x38] sm:$0xff]  ;;  %v239_v18 = vld [vmem:[%s220_s6 + $0x40] sm:$0xff] }
  0x15   : > { %484 = vmatprep.subr.bf16.mxu0 %v483_v9  ;;  %v495_v17 = vpack.c.bf16 %v238_v16, %v237_v15 }
  0x16   : > { %486 = vmatpush3.bf16.msra.mxu0 %v483_v9 }
  0x17   : > { %488 = vmatprep.subr.bf16.mxu0 %v487_v11 }
  0x1a   : > { %490 = vmatpush3.bf16.msra.mxu0 %v487_v11 }
  0x1b   : > { %492 = vmatprep.subr.bf16.mxu0 %v491_v14 }
  0x1e   : > { %494 = vmatpush3.bf16.msra.mxu0 %v491_v14 }
  0x1f   : > { %496 = vmatprep.subr.bf16.mxu0 %v495_v17 }
  0x22   : > { %498 = vmatpush3.bf16.msra.mxu0 %v495_v17 }
  0x23   : > { %478 = vmatprep.subr.mxu0 %v239_v18 }
  0x26   : > { %479 = vmatpush3.msra.mxu0 %v239_v18 }
  0x27   : > { %481 = vmatmul.mubr.msk.f32.vlgmr.msra.gmra.mrb[0].mxu0 %vm240_vm0, %v230_v19 }
  0x87   : > { %v327_v20 = vpop.permute.xlu0 %326 }
  0x88   : > { %v341_v21 = vpop.permute.xlu1 %340 }
  0x8b   : > { %v332_v22 = vpop.permute.xlu0 %331 }
  0x8c   : > { %v346_v26 = vpop.permute.xlu1 %345 }
  0xfa   : > { %v482_v23 = vpop.f32.mrb[0].mxu0 }
  0xfb   : > { %v335_v24 = vmul.f32 %v482_v23, %v332_v22  ;;  %v313_v25 = vpop.f32.mrb[1].mxu0 }
  0xfc   : > { %v334_v27 = vmul.f32 %v327_v20, %v313_v25 }
  0xfd   : > { %v349_v28 = vadd.f32 %v346_v26, %v335_v24 }
  0xfe   : > { %v348_v29 = vadd.f32 %v341_v21, %v334_v27 }
  0xff   : > { %v351_v30 = vmax.f32 %v349_v28, 0.0 }
 0x100   : > { %v350_v31 = vmax.f32 %v348_v29, 0.0 }
 0x101   : > { %354 = vst.msk [vmem:[%s228_s12 + $0x8] sm:$0xff] %vm352_vm1, %v351_v30 }
 0x102   : > { %353 = vst.msk [vmem:[%s228_s12] sm:$0xff] %vm352_vm1, %v350_v31 }
 0x103 PF: > { %s14_s17 = sadd.s32 1, %s549_s17   ;;  %s639_s15 = smov %s545_s16 }
 0x104   : > { %p11_p5 = scmp.ge.s32.totalorder %s14_s17, 4   ;;  %s640_s16 = smov %s642_s18 }
 0x106   :  { %13 = sbr.rel (!%p11_p5) target bundleno = 2 (0x2), region = 66 }

</bundles_post_ra>
